<compile_context>
chip_gen: v6e
topology: v6e:2x2x1
jax: 0.10.0
libtpu: 0.0.40
codegen_flags: <defaults>
</compile_context>

<pallas_src>
import math
from functools import partial

import jax
import jax.numpy as jnp
from jax import lax
from jax.experimental import pallas as pl
from jax.experimental.pallas import tpu as pltpu

SUBLANE = 8


def _round_up(v, m):
    return ((v + m - 1) // m) * m


# --------------------------------------------------------------------------
# Kernel body: LayerNorm -> Lin1 -> GELU -> Lin2 -> (+x)
# --------------------------------------------------------------------------
def ffn_kernel(x_ref, gamma_ref, beta_ref, w1_ref, b1_ref, w2_ref, b2_ref,
               out_ref, *, eps, approximate_gelu):
    x = x_ref[...].astype(jnp.float32)                       # (tm, H)

    # ---- LayerNorm (eps=1e-5, affine) over the real hidden dim ----
    mean = jnp.mean(x, axis=-1, keepdims=True)
    xc = x - mean
    var = jnp.mean(xc * xc, axis=-1, keepdims=True)
    xn = (xc * lax.rsqrt(var + eps)) * gamma_ref[...].astype(jnp.float32) \
         + beta_ref[...].astype(jnp.float32)

    # MXU operand dtype follows the (pre-cast) weight dtype; accumulate in f32.
    mm_dtype = w1_ref.dtype

    # ---- Lin1 + GELU ----
    h = jnp.dot(xn.astype(mm_dtype), w1_ref[...],
                preferred_element_type=jnp.float32) + b1_ref[...].astype(jnp.float32)
    if approximate_gelu:
        # tanh form -> EUP slot instead of a long VALU erf polynomial.
        c = math.sqrt(2.0 / math.pi)
        g = 0.5 * h * (1.0 + jnp.tanh(c * (h + 0.044715 * h * h * h)))
    else:
        # exact erf GELU (matches nn.GELU() default)
        g = 0.5 * h * (1.0 + lax.erf(h * (1.0 / math.sqrt(2.0))))

    # ---- Lin2 ----
    y = jnp.dot(g.astype(mm_dtype), w2_ref[...],
                preferred_element_type=jnp.float32) + b2_ref[...].astype(jnp.float32)

    # ---- dropout (eval mode -> identity) + residual ----
    # TODO(synk): training-mode dropout (p=args.dprate) not implemented; eval semantics only.
    out_ref[...] = (y + x).astype(out_ref.dtype)


# --------------------------------------------------------------------------
# One-time parameter preparation (hoisted out of the per-call path).
# --------------------------------------------------------------------------
def prepare_ffn_params(gamma, beta, w1, b1, w2, b2, *, use_bf16_matmul=False):
    """w1: (H, F), w2: (F, H) -- already transposed from torch's (out, in).

    Weight dtype keys off use_bf16_matmul only (never off activation dtype);
    gamma/beta/biases stay f32 so all elementwise math is f32 on every chip.
    Call once and cache; reuse the returned tuple across forward calls."""
    H = gamma.shape[0]
    F_dim = b1.shape[0]
    w_dtype = jnp.bfloat16 if use_bf16_matmul else jnp.float32
    params = (
        jnp.asarray(gamma, jnp.float32).reshape(1, H),
        jnp.asarray(beta, jnp.float32).reshape(1, H),
        jnp.asarray(w1, w_dtype),
        jnp.asarray(b1, jnp.float32).reshape(1, F_dim),
        jnp.asarray(w2, w_dtype),
        jnp.asarray(b2, jnp.float32).reshape(1, H),
    )
    return jax.device_put(params)


# --------------------------------------------------------------------------
# Wrapper helpers
# --------------------------------------------------------------------------
def _choose_tm(n, tm):
    tm = max(SUBLANE, min(tm, _round_up(n, SUBLANE)))
    tm = _round_up(tm, SUBLANE)
    # v7x megacore: make sure there are >=2 grid steps when there is enough
    # work, so both TensorCores are used under dimension_semantics=("parallel",).
    if pl.cdiv(n, tm) == 1 and n > 2 * SUBLANE:
        tm = _round_up(pl.cdiv(n, 2), SUBLANE)
    return tm


def _vmem_limit_bytes(tm, H, F_dim, w_itemsize, weight_bufs):
    act = 2 * 2 * tm * H * 4                                  # x + out tiles, double-buffered
    weights = weight_bufs * ((H * F_dim + F_dim * H) * w_itemsize
                             + (3 * H + F_dim) * 4)           # W1,W2 + gamma/beta/b1/b2
    interm = 3 * tm * F_dim * 4 + 2 * tm * H * 4              # h, g, xn, ...
    need = act + weights + interm + (2 << 20)
    try:
        cap = int(pltpu.get_tpu_info().vmem_capacity_bytes)   # 64 MiB/TC v7x, 128 MiB v5e/v6e
    except Exception:
        cap = 64 << 20                                        # conservative fallback
    return int(min(max(need, 32 << 20), max(3 * cap // 4, need)))


def _const_spec(shape, wmode):
    idx = lambda i: (0,) * len(shape)
    if wmode is None:
        return pl.BlockSpec(shape, idx)
    return pl.BlockSpec(shape, idx, pipeline_mode=wmode)


def _ffn_pallas(x, params, *, eps, tm, approximate_gelu, single_buffer_weights):
    gamma, beta, w1, b1, w2, b2 = params
    N, H = x.shape
    F_dim = w1.shape[1]
    grid = (pl.cdiv(N, tm),)

    wmode = pl.Buffered(buffer_count=1) if single_buffer_weights else None

    in_specs = [
        pl.BlockSpec((tm, H), lambda i: (i, 0)),          # x tile (real H, no lane pad)
        _const_spec((1, H), wmode),                       # gamma
        _const_spec((1, H), wmode),                       # beta
        _const_spec((H, F_dim), wmode),                   # W1 (H, F)
        _const_spec((1, F_dim), wmode),                   # b1
        _const_spec((F_dim, H), wmode),                   # W2 (F, H)
        _const_spec((1, H), wmode),                       # b2
    ]

    vmem_limit = _vmem_limit_bytes(tm, H, F_dim, jnp.dtype(w1.dtype).itemsize,
                                   1 if single_buffer_weights else 2)

    kernel = partial(ffn_kernel, eps=eps, approximate_gelu=approximate_gelu)
    return pl.pallas_call(
        kernel,
        out_shape=jax.ShapeDtypeStruct((N, H), x.dtype),
        grid=grid,
        in_specs=in_specs,
        out_specs=pl.BlockSpec((tm, H), lambda i: (i, 0)),
        compiler_params=pltpu.CompilerParams(
            dimension_semantics=("parallel",),
            vmem_limit_bytes=vmem_limit),
    )(x, gamma, beta, w1, b1, w2, b2)


def ffn_forward(x, params, *, eps=1e-5, tm=512, approximate_gelu=False,
                single_buffer_weights=True):
    """x: (N, H) tokens x hidden.  params: output of prepare_ffn_params()."""
    N, _ = x.shape
    tm_eff = _choose_tm(N, tm)
    run = partial(_ffn_pallas, x, params, eps=eps, tm=tm_eff,
                  approximate_gelu=approximate_gelu)
    if single_buffer_weights:
        try:
            return run(single_buffer_weights=True)
        except Exception:
            # pl.Buffered(1) not supported on this jax version -> default double buffering.
            pass
    return run(single_buffer_weights=False)


# --------------------------------------------------------------------------
# Pure-JAX reference (matches the torch module in eval mode)
# --------------------------------------------------------------------------
def ffn_reference(x, gamma, beta, w1, b1, w2, b2, eps=1e-5):
    x = x.astype(jnp.float32)
    mean = jnp.mean(x, axis=-1, keepdims=True)
    var = jnp.mean((x - mean) ** 2, axis=-1, keepdims=True)
    xn = (x - mean) / jnp.sqrt(var + eps) * gamma + beta
    h = jnp.dot(xn, w1, precision=lax.Precision.HIGHEST) + b1
    g = 0.5 * h * (1.0 + lax.erf(h / math.sqrt(2.0)))
    y = jnp.dot(g, w2, precision=lax.Precision.HIGHEST) + b2
    return y + x


if __name__ == "__main__":
    # Shapes implied by the module: args.hidden=32, args.d_ffn=64, seq=8.
    H, F_dim = 32, 64
    key = jax.random.PRNGKey(0)
    kx, kg, kb, kw1, kb1, kw2, kb2, kx2 = jax.random.split(key, 8)

    gamma = 1.0 + 0.05 * jax.random.normal(kg, (H,), dtype=jnp.float32)
    beta = 0.05 * jax.random.normal(kb, (H,), dtype=jnp.float32)

    # torch Linear weight (out, in) -> pre-transposed to (in, out) here.
    bound1 = 1.0 / math.sqrt(H)
    w1 = jax.random.uniform(kw1, (H, F_dim), jnp.float32, -bound1, bound1)
    b1 = jax.random.uniform(kb1, (F_dim,), jnp.float32, -bound1, bound1)
    bound2 = 1.0 / math.sqrt(F_dim)
    w2 = jax.random.uniform(kw2, (F_dim, H), jnp.float32, -bound2, bound2)
    b2 = jax.random.uniform(kb2, (H,), jnp.float32, -bound2, bound2)

    # One-time parameter prep (exact f32 path -> matches torch semantics).
    params_f32 = prepare_ffn_params(gamma, beta, w1, b1, w2, b2)

    # Case 1: tiny N=8 (seq=8, hidden=32), single grid step.
    x = jax.random.normal(kx, (8, H), dtype=jnp.float32)
    out = jax.block_until_ready(ffn_forward(x, params_f32))
    ref = ffn_reference(x, gamma, beta, w1, b1, w2, b2)
    assert jnp.allclose(out, ref, atol=5e-4, rtol=5e-4), (
        float(jnp.max(jnp.abs(out - ref))))

    # Case 2: ragged N exercising the multi-step parallel grid (N % tm != 0).
    x2 = jax.random.normal(kx2, (1000, H), dtype=jnp.float32)
    out2 = jax.block_until_ready(ffn_forward(x2, params_f32, tm=512))
    ref2 = ffn_reference(x2, gamma, beta, w1, b1, w2, b2)
    assert jnp.allclose(out2, ref2, atol=5e-4, rtol=5e-4), (
        float(jnp.max(jnp.abs(out2 - ref2))))

    # Case 3: perf-mode path for v6e/v7x (bf16 MXU weights + tanh GELU on the
    # EUP); looser tolerance since both knobs deviate slightly from exact f32/erf.
    params_bf16 = prepare_ffn_params(gamma, beta, w1, b1, w2, b2,
                                     use_bf16_matmul=True)
    out3 = jax.block_until_ready(
        ffn_forward(x2, params_bf16, approximate_gelu=True))
    assert jnp.allclose(out3, ref2, atol=5e-2, rtol=5e-2), (
        float(jnp.max(jnp.abs(out3 - ref2))))

    print("KERNEL_OK")
</pallas_src>

<mosaic_0001>
module attributes {stable_mosaic.version = 11 : i64} {
  func.func @ffn_kernel(%arg0: i32, %arg1: memref<8x32xf32, #tpu.memory_space<vmem>>, %arg2: memref<1x32xf32, #tpu.memory_space<vmem>>, %arg3: memref<1x32xf32, #tpu.memory_space<vmem>>, %arg4: memref<32x64xf32, #tpu.memory_space<vmem>>, %arg5: memref<1x64xf32, #tpu.memory_space<vmem>>, %arg6: memref<64x32xf32, #tpu.memory_space<vmem>>, %arg7: memref<1x32xf32, #tpu.memory_space<vmem>>, %arg8: memref<8x32xf32, #tpu.memory_space<vmem>>) attributes {dimension_semantics = [#tpu.dimension_semantics<parallel>], iteration_bounds = array<i64: 1>, scalar_prefetch = 0 : i64, scratch_operands = 0 : i64, tpu.core_type = #tpu.core_type<tc>, window_params = [{transform_indices = @transform_0, window_bounds = array<i64: 8, 32>}, {pipeline_mode = #tpu.pipeline_mode<synchronous>, transform_indices = @transform_1, window_bounds = array<i64: 1, 32>}, {pipeline_mode = #tpu.pipeline_mode<synchronous>, transform_indices = @transform_2, window_bounds = array<i64: 1, 32>}, {pipeline_mode = #tpu.pipeline_mode<synchronous>, transform_indices = @transform_3, window_bounds = array<i64: 32, 64>}, {pipeline_mode = #tpu.pipeline_mode<synchronous>, transform_indices = @transform_4, window_bounds = array<i64: 1, 64>}, {pipeline_mode = #tpu.pipeline_mode<synchronous>, transform_indices = @transform_5, window_bounds = array<i64: 64, 32>}, {pipeline_mode = #tpu.pipeline_mode<synchronous>, transform_indices = @transform_6, window_bounds = array<i64: 1, 32>}, {transform_indices = @transform_7, window_bounds = array<i64: 8, 32>}]} {
    %c0 = arith.constant 0 : index
    %c0_0 = arith.constant 0 : index
    %0 = vector.load %arg1[%c0, %c0_0] : memref<8x32xf32, #tpu.memory_space<vmem>>, vector<8x32xf32>
    %cst = arith.constant dense<0.000000e+00> : vector<8xf32>
    %1 = vector.multi_reduction <add>, %0, %cst [1] : vector<8x32xf32> to vector<8xf32>
    %2 = vector.shape_cast %1 : vector<8xf32> to vector<8x1xf32>
    %cst_1 = arith.constant 3.200000e+01 : f32
    %3 = vector.broadcast %cst_1 : f32 to vector<8x1xf32>
    %4 = arith.divf %2, %3 : vector<8x1xf32>
    %5 = vector.broadcast %4 : vector<8x1xf32> to vector<8x32xf32>
    %6 = arith.subf %0, %5 : vector<8x32xf32>
    %7 = arith.mulf %6, %6 : vector<8x32xf32>
    %cst_2 = arith.constant dense<0.000000e+00> : vector<8xf32>
    %8 = vector.multi_reduction <add>, %7, %cst_2 [1] : vector<8x32xf32> to vector<8xf32>
    %9 = vector.shape_cast %8 : vector<8xf32> to vector<8x1xf32>
    %cst_3 = arith.constant 3.200000e+01 : f32
    %10 = vector.broadcast %cst_3 : f32 to vector<8x1xf32>
    %11 = arith.divf %9, %10 : vector<8x1xf32>
    %cst_4 = arith.constant 9.99999974E-6 : f32
    %12 = vector.broadcast %cst_4 : f32 to vector<8x1xf32>
    %13 = arith.addf %11, %12 : vector<8x1xf32>
    %14 = math.rsqrt %13 : vector<8x1xf32>
    %15 = vector.broadcast %14 : vector<8x1xf32> to vector<8x32xf32>
    %16 = arith.mulf %6, %15 : vector<8x32xf32>
    %c0_5 = arith.constant 0 : index
    %c0_6 = arith.constant 0 : index
    %17 = vector.load %arg2[%c0_5, %c0_6] : memref<1x32xf32, #tpu.memory_space<vmem>>, vector<1x32xf32>
    %18 = vector.broadcast %17 : vector<1x32xf32> to vector<8x32xf32>
    %19 = arith.mulf %16, %18 : vector<8x32xf32>
    %c0_7 = arith.constant 0 : index
    %c0_8 = arith.constant 0 : index
    %20 = vector.load %arg3[%c0_7, %c0_8] : memref<1x32xf32, #tpu.memory_space<vmem>>, vector<1x32xf32>
    %21 = vector.broadcast %20 : vector<1x32xf32> to vector<8x32xf32>
    %22 = arith.addf %19, %21 : vector<8x32xf32>
    %c0_9 = arith.constant 0 : index
    %c0_10 = arith.constant 0 : index
    %23 = vector.load %arg4[%c0_9, %c0_10] : memref<32x64xf32, #tpu.memory_space<vmem>>, vector<32x64xf32>
    %cst_11 = arith.constant dense<0.000000e+00> : vector<8x64xf32>
    %24 = tpu.matmul %22, %23, %cst_11 {dimension_numbers = #tpu.dot_dimension_numbers<[1], [0], [0], [1], [0, 0, 1, 1], [], []>} : vector<8x32xf32>, vector<32x64xf32>, vector<8x64xf32> -> vector<8x64xf32>
    %c0_12 = arith.constant 0 : index
    %c0_13 = arith.constant 0 : index
    %25 = vector.load %arg5[%c0_12, %c0_13] : memref<1x64xf32, #tpu.memory_space<vmem>>, vector<1x64xf32>
    %26 = vector.broadcast %25 : vector<1x64xf32> to vector<8x64xf32>
    %27 = arith.addf %24, %26 : vector<8x64xf32>
    %cst_14 = arith.constant 5.000000e-01 : f32
    %28 = vector.broadcast %cst_14 : f32 to vector<8x64xf32>
    %29 = arith.mulf %28, %27 : vector<8x64xf32>
    %cst_15 = arith.constant 0.707106769 : f32
    %30 = vector.broadcast %cst_15 : f32 to vector<8x64xf32>
    %31 = arith.mulf %27, %30 : vector<8x64xf32>
    %32 = math.erf %31 : vector<8x64xf32>
    %cst_16 = arith.constant 1.000000e+00 : f32
    %33 = vector.broadcast %cst_16 : f32 to vector<8x64xf32>
    %34 = arith.addf %33, %32 : vector<8x64xf32>
    %35 = arith.mulf %29, %34 : vector<8x64xf32>
    %c0_17 = arith.constant 0 : index
    %c0_18 = arith.constant 0 : index
    %36 = vector.load %arg6[%c0_17, %c0_18] : memref<64x32xf32, #tpu.memory_space<vmem>>, vector<64x32xf32>
    %cst_19 = arith.constant dense<0.000000e+00> : vector<8x32xf32>
    %37 = tpu.matmul %35, %36, %cst_19 {dimension_numbers = #tpu.dot_dimension_numbers<[1], [0], [0], [1], [0, 0, 1, 1], [], []>} : vector<8x64xf32>, vector<64x32xf32>, vector<8x32xf32> -> vector<8x32xf32>
    %c0_20 = arith.constant 0 : index
    %c0_21 = arith.constant 0 : index
    %38 = vector.load %arg7[%c0_20, %c0_21] : memref<1x32xf32, #tpu.memory_space<vmem>>, vector<1x32xf32>
    %39 = vector.broadcast %38 : vector<1x32xf32> to vector<8x32xf32>
    %40 = arith.addf %37, %39 : vector<8x32xf32>
    %41 = arith.addf %40, %0 : vector<8x32xf32>
    %c0_22 = arith.constant 0 : index
    %c0_23 = arith.constant 0 : index
    %42 = vector.load %arg8[%c0_22, %c0_23] : memref<8x32xf32, #tpu.memory_space<vmem>>, vector<8x32xf32>
    tpu.vector_store %arg8[%c0_22, %c0_23], %41 {strides = array<i32>} : memref<8x32xf32, #tpu.memory_space<vmem>>, vector<8x32xf32>,
    return
  }
  func.func @transform_0(%arg0: i32) -> (i32, i32) {
    %c0_i32 = arith.constant 0 : i32
    %c0_i32_0 = arith.constant 0 : i32
    return %arg0, %c0_i32 : i32, i32
  }
  func.func @transform_1(%arg0: i32) -> (i32, i32) {
    %c0_i32 = arith.constant 0 : i32
    %c0_i32_0 = arith.constant 0 : i32
    %c0_i32_1 = arith.constant 0 : i32
    return %c0_i32, %c0_i32_0 : i32, i32
  }
  func.func @transform_2(%arg0: i32) -> (i32, i32) {
    %c0_i32 = arith.constant 0 : i32
    %c0_i32_0 = arith.constant 0 : i32
    %c0_i32_1 = arith.constant 0 : i32
    return %c0_i32, %c0_i32_0 : i32, i32
  }
  func.func @transform_3(%arg0: i32) -> (i32, i32) {
    %c0_i32 = arith.constant 0 : i32
    %c0_i32_0 = arith.constant 0 : i32
    %c0_i32_1 = arith.constant 0 : i32
    return %c0_i32, %c0_i32_0 : i32, i32
  }
  func.func @transform_4(%arg0: i32) -> (i32, i32) {
    %c0_i32 = arith.constant 0 : i32
    %c0_i32_0 = arith.constant 0 : i32
    %c0_i32_1 = arith.constant 0 : i32
    return %c0_i32, %c0_i32_0 : i32, i32
  }
  func.func @transform_5(%arg0: i32) -> (i32, i32) {
    %c0_i32 = arith.constant 0 : i32
    %c0_i32_0 = arith.constant 0 : i32
    %c0_i32_1 = arith.constant 0 : i32
    return %c0_i32, %c0_i32_0 : i32, i32
  }
  func.func @transform_6(%arg0: i32) -> (i32, i32) {
    %c0_i32 = arith.constant 0 : i32
    %c0_i32_0 = arith.constant 0 : i32
    %c0_i32_1 = arith.constant 0 : i32
    return %c0_i32, %c0_i32_0 : i32, i32
  }
  func.func @transform_7(%arg0: i32) -> (i32, i32) {
    %c0_i32 = arith.constant 0 : i32
    %c0_i32_0 = arith.constant 0 : i32
    return %arg0, %c0_i32 : i32, i32
  }
}

module attributes {stable_mosaic.version = 11 : i64} {
  func.func @ffn_kernel(%arg0: i32, %arg1: memref<8x32xf32, #tpu.memory_space<vmem>>, %arg2: memref<1x32xf32, #tpu.memory_space<vmem>>, %arg3: memref<1x32xf32, #tpu.memory_space<vmem>>, %arg4: memref<32x64xf32, #tpu.memory_space<vmem>>, %arg5: memref<1x64xf32, #tpu.memory_space<vmem>>, %arg6: memref<64x32xf32, #tpu.memory_space<vmem>>, %arg7: memref<1x32xf32, #tpu.memory_space<vmem>>, %arg8: memref<8x32xf32, #tpu.memory_space<vmem>>) attributes {dimension_semantics = [#tpu.dimension_semantics<parallel>], iteration_bounds = array<i64: 1>, scalar_prefetch = 0 : i64, scratch_operands = 0 : i64, tpu.core_type = #tpu.core_type<tc>, window_params = [{transform_indices = @transform_0, window_bounds = array<i64: 8, 32>}, {pipeline_mode = #tpu.pipeline_mode<synchronous>, transform_indices = @transform_1, window_bounds = array<i64: 1, 32>}, {pipeline_mode = #tpu.pipeline_mode<synchronous>, transform_indices = @transform_2, window_bounds = array<i64: 1, 32>}, {pipeline_mode = #tpu.pipeline_mode<synchronous>, transform_indices = @transform_3, window_bounds = array<i64: 32, 64>}, {pipeline_mode = #tpu.pipeline_mode<synchronous>, transform_indices = @transform_4, window_bounds = array<i64: 1, 64>}, {pipeline_mode = #tpu.pipeline_mode<synchronous>, transform_indices = @transform_5, window_bounds = array<i64: 64, 32>}, {pipeline_mode = #tpu.pipeline_mode<synchronous>, transform_indices = @transform_6, window_bounds = array<i64: 1, 32>}, {transform_indices = @transform_7, window_bounds = array<i64: 8, 32>}]} {
    %c0 = arith.constant 0 : index
    %c0_0 = arith.constant 0 : index
    %0 = vector.load %arg1[%c0, %c0_0] : memref<8x32xf32, #tpu.memory_space<vmem>>, vector<8x32xf32>
    %cst = arith.constant dense<0.000000e+00> : vector<8xf32>
    %1 = vector.multi_reduction <add>, %0, %cst [1] : vector<8x32xf32> to vector<8xf32>
    %2 = vector.shape_cast %1 : vector<8xf32> to vector<8x1xf32>
    %cst_1 = arith.constant 3.200000e+01 : f32
    %3 = vector.broadcast %cst_1 : f32 to vector<8x1xf32>
    %4 = arith.divf %2, %3 : vector<8x1xf32>
    %5 = vector.broadcast %4 : vector<8x1xf32> to vector<8x32xf32>
    %6 = arith.subf %0, %5 : vector<8x32xf32>
    %7 = arith.mulf %6, %6 : vector<8x32xf32>
    %cst_2 = arith.constant dense<0.000000e+00> : vector<8xf32>
    %8 = vector.multi_reduction <add>, %7, %cst_2 [1] : vector<8x32xf32> to vector<8xf32>
    %9 = vector.shape_cast %8 : vector<8xf32> to vector<8x1xf32>
    %cst_3 = arith.constant 3.200000e+01 : f32
    %10 = vector.broadcast %cst_3 : f32 to vector<8x1xf32>
    %11 = arith.divf %9, %10 : vector<8x1xf32>
    %cst_4 = arith.constant 9.99999974E-6 : f32
    %12 = vector.broadcast %cst_4 : f32 to vector<8x1xf32>
    %13 = arith.addf %11, %12 : vector<8x1xf32>
    %14 = math.rsqrt %13 : vector<8x1xf32>
    %15 = vector.broadcast %14 : vector<8x1xf32> to vector<8x32xf32>
    %16 = arith.mulf %6, %15 : vector<8x32xf32>
    %c0_5 = arith.constant 0 : index
    %c0_6 = arith.constant 0 : index
    %17 = vector.load %arg2[%c0_5, %c0_6] : memref<1x32xf32, #tpu.memory_space<vmem>>, vector<1x32xf32>
    %18 = vector.broadcast %17 : vector<1x32xf32> to vector<8x32xf32>
    %19 = arith.mulf %16, %18 : vector<8x32xf32>
    %c0_7 = arith.constant 0 : index
    %c0_8 = arith.constant 0 : index
    %20 = vector.load %arg3[%c0_7, %c0_8] : memref<1x32xf32, #tpu.memory_space<vmem>>, vector<1x32xf32>
    %21 = vector.broadcast %20 : vector<1x32xf32> to vector<8x32xf32>
    %22 = arith.addf %19, %21 : vector<8x32xf32>
    %c0_9 = arith.constant 0 : index
    %c0_10 = arith.constant 0 : index
    %23 = vector.load %arg4[%c0_9, %c0_10] : memref<32x64xf32, #tpu.memory_space<vmem>>, vector<32x64xf32>
    %cst_11 = arith.constant dense<0.000000e+00> : vector<8x64xf32>
    %24 = tpu.matmul %22, %23, %cst_11 {dimension_numbers = #tpu.dot_dimension_numbers<[1], [0], [0], [1], [0, 0, 1, 1], [], []>} : vector<8x32xf32>, vector<32x64xf32>, vector<8x64xf32> -> vector<8x64xf32>
    %c0_12 = arith.constant 0 : index
    %c0_13 = arith.constant 0 : index
    %25 = vector.load %arg5[%c0_12, %c0_13] : memref<1x64xf32, #tpu.memory_space<vmem>>, vector<1x64xf32>
    %26 = vector.broadcast %25 : vector<1x64xf32> to vector<8x64xf32>
    %27 = arith.addf %24, %26 : vector<8x64xf32>
    %cst_14 = arith.constant 5.000000e-01 : f32
    %28 = vector.broadcast %cst_14 : f32 to vector<8x64xf32>
    %29 = arith.mulf %28, %27 : vector<8x64xf32>
    %cst_15 = arith.constant 0.707106769 : f32
    %30 = vector.broadcast %cst_15 : f32 to vector<8x64xf32>
    %31 = arith.mulf %27, %30 : vector<8x64xf32>
    %32 = math.erf %31 : vector<8x64xf32>
    %cst_16 = arith.constant 1.000000e+00 : f32
    %33 = vector.broadcast %cst_16 : f32 to vector<8x64xf32>
    %34 = arith.addf %33, %32 : vector<8x64xf32>
    %35 = arith.mulf %29, %34 : vector<8x64xf32>
    %c0_17 = arith.constant 0 : index
    %c0_18 = arith.constant 0 : index
    %36 = vector.load %arg6[%c0_17, %c0_18] : memref<64x32xf32, #tpu.memory_space<vmem>>, vector<64x32xf32>
    %cst_19 = arith.constant dense<0.000000e+00> : vector<8x32xf32>
    %37 = tpu.matmul %35, %36, %cst_19 {dimension_numbers = #tpu.dot_dimension_numbers<[1], [0], [0], [1], [0, 0, 1, 1], [], []>} : vector<8x64xf32>, vector<64x32xf32>, vector<8x32xf32> -> vector<8x32xf32>
    %c0_20 = arith.constant 0 : index
    %c0_21 = arith.constant 0 : index
    %38 = vector.load %arg7[%c0_20, %c0_21] : memref<1x32xf32, #tpu.memory_space<vmem>>, vector<1x32xf32>
    %39 = vector.broadcast %38 : vector<1x32xf32> to vector<8x32xf32>
    %40 = arith.addf %37, %39 : vector<8x32xf32>
    %41 = arith.addf %40, %0 : vector<8x32xf32>
    %c0_22 = arith.constant 0 : index
    %c0_23 = arith.constant 0 : index
    %42 = vector.load %arg8[%c0_22, %c0_23] : memref<8x32xf32, #tpu.memory_space<vmem>>, vector<8x32xf32>
    tpu.vector_store %arg8[%c0_22, %c0_23], %41 {strides = array<i32>} : memref<8x32xf32, #tpu.memory_space<vmem>>, vector<8x32xf32>,
    return
  }
  func.func @transform_0(%arg0: i32) -> (i32, i32) {
    %c0_i32 = arith.constant 0 : i32
    %c0_i32_0 = arith.constant 0 : i32
    return %arg0, %c0_i32 : i32, i32
  }
  func.func @transform_1(%arg0: i32) -> (i32, i32) {
    %c0_i32 = arith.constant 0 : i32
    %c0_i32_0 = arith.constant 0 : i32
    %c0_i32_1 = arith.constant 0 : i32
    return %c0_i32, %c0_i32_0 : i32, i32
  }
  func.func @transform_2(%arg0: i32) -> (i32, i32) {
    %c0_i32 = arith.constant 0 : i32
    %c0_i32_0 = arith.constant 0 : i32
    %c0_i32_1 = arith.constant 0 : i32
    return %c0_i32, %c0_i32_0 : i32, i32
  }
  func.func @transform_3(%arg0: i32) -> (i32, i32) {
    %c0_i32 = arith.constant 0 : i32
    %c0_i32_0 = arith.constant 0 : i32
    %c0_i32_1 = arith.constant 0 : i32
    return %c0_i32, %c0_i32_0 : i32, i32
  }
  func.func @transform_4(%arg0: i32) -> (i32, i32) {
    %c0_i32 = arith.constant 0 : i32
    %c0_i32_0 = arith.constant 0 : i32
    %c0_i32_1 = arith.constant 0 : i32
    return %c0_i32, %c0_i32_0 : i32, i32
  }
  func.func @transform_5(%arg0: i32) -> (i32, i32) {
    %c0_i32 = arith.constant 0 : i32
    %c0_i32_0 = arith.constant 0 : i32
    %c0_i32_1 = arith.constant 0 : i32
    return %c0_i32, %c0_i32_0 : i32, i32
  }
  func.func @transform_6(%arg0: i32) -> (i32, i32) {
    %c0_i32 = arith.constant 0 : i32
    %c0_i32_0 = arith.constant 0 : i32
    %c0_i32_1 = arith.constant 0 : i32
    return %c0_i32, %c0_i32_0 : i32, i32
  }
  func.func @transform_7(%arg0: i32) -> (i32, i32) {
    %c0_i32 = arith.constant 0 : i32
    %c0_i32_0 = arith.constant 0 : i32
    return %arg0, %c0_i32 : i32, i32
  }
}

</mosaic_0001>

<bundles_post_ra>
// kernel: tpu_custom_call.1
= control target key start
LH: loop header
LB: loop body
LE: loop exit
PB: predicated region body
PF: predicated region fallthrough
CT: control target
= control target key end

     0   :  { %vm28_vm0 = vcmask 261120   ;;  %s438_s0 = inlined_call_operand.vmem [shape: f32[8,32], index: 0, kind: input, shape index: {}]   ;;  %s439_s1 = inlined_call_operand.vmem [shape: f32[1,32], index: 1, kind: input, shape index: {}]   ;;  %s440_s2 = inlined_call_operand.vmem [shape: f32[1,32], index: 2, kind: input, shape index: {}]   ;;  %s441_s3 = inlined_call_operand.vmem [shape: f32[32,64], index: 3, kind: input, shape index: {}]   ;;  %s442_s4 = inlined_call_operand.vmem [shape: f32[1,64], index: 4, kind: input, shape index: {}]   ;;  %s443_s5 = inlined_call_operand.vmem [shape: f32[64,32], index: 5, kind: input, shape index: {}]   ;;  %s444_s6 = inlined_call_operand.vmem [shape: f32[1,32], index: 6, kind: input, shape index: {}]   ;;  %s445_s7 = inlined_call_operand.hbm [shape: f32[8,32], index: 7, kind: output, shape index: {}]  }
   0x1   :  { %v378_v0 = vld [vmem:[%s438_s0] sm:$0xff] }
   0x2   :  { %12 = vsyncpa [#allocation3], 0  ;;  %v29_v1 = vsel %vm28_vm0, %v378_v0, 0.0  ;;  %v62_v7 = vld [vmem:[%s441_s3 + $0x18] sm:$0xff]  ;;  %v332_v8 = vmov 0.0   ;;  %v61_v9 = vld [vmem:[%s441_s3 + $0x10] sm:$0xff] }
   0x3   :  { %30 = vadd.xlane.f32.xlu0 %v29_v1  ;;  %273 = vmatprep.subr.mxu0 %v332_v8  ;;  %vm333_vm1 = vmmov 0   ;;  %v60_v10 = vld [vmem:[%s441_s3 + $0x8] sm:$0xff]  ;;  %v59_v11 = vld [vmem:[%s441_s3] sm:$0xff]  ;;  %v155_v21 = vld [vmem:[%s443_s5 + $0x38] sm:$0xff]  ;;  %vm163_vm2 = vcmask 523264  }
   0x4   :  { %281 = vmatprep.mubr.msk.f32.mxu0 %vm333_vm1, %v332_v8  ;;  %274 = vmatpush3.msra.mxu0 %v62_v7  ;;  %v253_v16 = vld [vmem:[%s439_s1] ss:$0 sm:$0xff]  ;;  %v154_v22 = vld [vmem:[%s443_s5 + $0x30] sm:$0xff]  ;;  %v153_v23 = vld [vmem:[%s443_s5 + $0x28] sm:$0xff] }
   0x5   :  { %284 = vmatprep.subr.mxu1 %v332_v8  ;;  %275 = vmatprep.subr.mxu0 %v332_v8  ;;  %v254_v18 = vld [vmem:[%s440_s2] ss:$0 sm:$0xff]  ;;  %v151_v25 = vld [vmem:[%s443_s5 + $0x18] sm:$0xff]  ;;  %v150_v26 = vld [vmem:[%s443_s5 + $0x10] sm:$0xff] }
   0x6   :  { %300 = vmatprep.mubr.msk.f32.mxu1 %vm333_vm1, %v332_v8  ;;  %276 = vmatpush3.msra.mxu0 %v61_v9  ;;  %v152_v24 = vld [vmem:[%s443_s5 + $0x20] sm:$0xff]  ;;  %v149_v27 = vld [vmem:[%s443_s5 + $0x8] sm:$0xff] }
   0x7   :  { %277 = vmatprep.subr.mxu0 %v332_v8  ;;  %285 = vmatpush3.msra.mxu1 %v155_v21  ;;  %v148_v28 = vld [vmem:[%s443_s5] sm:$0xff]  ;;  %s334_s5 = smov [#allocation2]  }
   0x8   :  { %278 = vmatpush3.msra.mxu0 %v60_v10  ;;  %286 = vmatprep.subr.mxu1 %v332_v8  ;;  %v255_v29 = vld [vmem:[%s442_s4] ss:$0 sm:$0xff]  ;;  %s245_s30 = sshll.u32 %s334_s5, 4  ;;  %s246_s30 = int_to_ptr.vmem [resolvable:$true] %s245_s30 }
   0x9   :  { %279 = vmatprep.subr.mxu0 %v332_v8  ;;  %287 = vmatpush3.msra.mxu1 %v154_v22  ;;  %v257_v38 = vld [vmem:[%s444_s6] ss:$0 sm:$0xff]  ;;  %s310_s4 = scalar_lea.vmem %s246_s30, 128  ;;  %p315_p1 = scmp.lt.s32.totalorder %s246_s30, %s246_s30 }
   0xa   :  { %280 = vmatpush3.msra.mxu0 %v59_v11  ;;  %288 = vmatprep.subr.mxu1 %v332_v8  ;;  %p311_p0 = scmp.ne.s32.totalorder %s246_s30, %s310_s4  ;;  %p316_p2 = scmp.lt.s32.totalorder %s310_s4, %s310_s4 }
   0xb   :  { %289 = vmatpush3.msra.mxu1 %v153_v23 }
   0xc   :  { %290 = vmatprep.subr.mxu1 %v332_v8  ;;  %p317_p3 = por %p316_p2, %p315_p1 }
   0xd   :  { %291 = vmatpush3.msra.mxu1 %v152_v24 }
   0xe   :  { %292 = vmatprep.subr.mxu1 %v332_v8  ;;  %p318_p4 = pnand %p317_p3, %p311_p0 }
   0xf   :  { %293 = vmatpush3.msra.mxu1 %v151_v25 }
  0x10   :  { %294 = vmatprep.subr.mxu1 %v332_v8 }
  0x11   :  { %295 = vmatpush3.msra.mxu1 %v150_v26 }
  0x12   :  { %296 = vmatprep.subr.mxu1 %v332_v8 }
  0x13   :  { %297 = vmatpush3.msra.mxu1 %v149_v27 }
  0x14   :  { %298 = vmatprep.subr.mxu1 %v332_v8 }
  0x15   :  { %299 = vmatpush3.msra.mxu1 %v148_v28 }
  0x8c   :  { %v31_v2 = vpop.xlane.xlu0 %30 }
  0x8d   :  { %v33_v3 = vmul.f32 0.03125, %v31_v2 }
  0x8f   :  { %v34_v4 = vsub.f32 %v378_v0, %v33_v3 }
  0x91   :  { %v35_v5 = vmul.f32 %v34_v4, %v34_v4 }
  0x93   :  { %v36_v6 = vsel %vm28_vm0, %v35_v5, 0.0 }
  0x94   :  { %37 = vadd.xlane.f32.xlu0 %v36_v6 }
 0x11d   :  { %v38_v12 = vpop.xlane.xlu0 %37 }
 0x11e   :  { %v39_v13 = vmul.f32 0.03125, %v38_v12 }
 0x120   :  { %v40_v14 = vadd.f32 1e-05, %v39_v13 }
 0x122   :  { %306 = vrsqrt.f32 %v40_v14 }
 0x12f   :  { %v307_v15 = vpop.eup %306 }
 0x130   :  { %v42_v17 = vmul.f32 %v307_v15, %v34_v4 }
 0x132   :  { %v50_v19 = vmul.f32 %v253_v16, %v42_v17 }
 0x134   :  { %v58_v20 = vadd.f32 %v254_v18, %v50_v19 }
 0x136   :  { %282 = vmatmul.mubr.msk.f32.vlgmr.msra.gmra.mxu0 %vm28_vm0, %v58_v20 }
 0x1f6   :  { %v139_v30 = vpop.f32.mrf.mxu0 }
 0x1f7   :  { %v140_v31 = vadd.f32 %v255_v29, %v139_v30 }
 0x1f8   :  { %v283_v32 = vpop.f32.mrf.mxu0 }
 0x1f9   :  { %v144_v33 = vmul.f32 0.70710677, %v140_v31  ;;  %v143_v35 = vmul.f32 0.5, %v140_v31 }
 0x1fb   :  { %308 = verf.f32 %v144_v33 }
 0x208   :  { %v309_v34 = vpop.eup %308 }
 0x209   :  { %v146_v36 = vadd.f32 1.0, %v309_v34 }
 0x20b   :  { %v147_v37 = vmul.f32 %v146_v36, %v143_v35 }
 0x20d   :  { %301 = vmatmul.mubr.msk.f32.vlgmr.msra.gmra.mxu1 %vm163_vm2, %v147_v37 }
 0x2cd   :  { %v233_v39 = vpop.f32.mrf.mxu1 }
 0x2ce   :  { %v234_v40 = vadd.f32 %v257_v38, %v233_v39 }
 0x2cf   :  { %v302_v41 = vpop.f32.mrf.mxu1 }
 0x2d0   :  { %v237_v42 = vadd.f32 %v234_v40, %v378_v0 }
 0x2d2   :  { %238 = vst.msk [vmem:[#allocation2] sm:$0xff] %vm28_vm0, %v237_v42 }
 0x2d3   :  { %321 = shalt.err (!%p318_p4)
}
 0x2d4   :  { %248 = dma.vmem_to_hbm [thread:$0]  %s246_s30, 128, %s445_s7, [#allocation3]  }
 0x2d5   :  { %330 = dma.done.wait [#allocation3], 128  }
 0x2d6   :  { %331 = vsyncadd [#allocation3], 4294967168 }
 0x2d7   :  { %252 = vsyncpa [#allocation3], 1 }

// kernel: tpu_custom_call.1
= control target key start
LH: loop header
LB: loop body
LE: loop exit
PB: predicated region body
PF: predicated region fallthrough
CT: control target
= control target key end

     0   :  { %vm28_vm0 = vcmask 261120   ;;  %s438_s0 = inlined_call_operand.vmem [shape: f32[8,32], index: 0, kind: input, shape index: {}]   ;;  %s439_s1 = inlined_call_operand.vmem [shape: f32[1,32], index: 1, kind: input, shape index: {}]   ;;  %s440_s2 = inlined_call_operand.vmem [shape: f32[1,32], index: 2, kind: input, shape index: {}]   ;;  %s441_s3 = inlined_call_operand.vmem [shape: f32[32,64], index: 3, kind: input, shape index: {}]   ;;  %s442_s4 = inlined_call_operand.vmem [shape: f32[1,64], index: 4, kind: input, shape index: {}]   ;;  %s443_s5 = inlined_call_operand.vmem [shape: f32[64,32], index: 5, kind: input, shape index: {}]   ;;  %s444_s6 = inlined_call_operand.vmem [shape: f32[1,32], index: 6, kind: input, shape index: {}]   ;;  %s445_s7 = inlined_call_operand.hbm [shape: f32[8,32], index: 7, kind: output, shape index: {}]  }
   0x1   :  { %v378_v0 = vld [vmem:[%s438_s0] sm:$0xff] }
   0x2   :  { %12 = vsyncpa [#allocation3], 0  ;;  %v29_v1 = vsel %vm28_vm0, %v378_v0, 0.0  ;;  %v62_v7 = vld [vmem:[%s441_s3 + $0x18] sm:$0xff]  ;;  %v332_v8 = vmov 0.0   ;;  %v61_v9 = vld [vmem:[%s441_s3 + $0x10] sm:$0xff] }
   0x3   :  { %30 = vadd.xlane.f32.xlu0 %v29_v1  ;;  %273 = vmatprep.subr.mxu0 %v332_v8  ;;  %vm333_vm1 = vmmov 0   ;;  %v60_v10 = vld [vmem:[%s441_s3 + $0x8] sm:$0xff]  ;;  %v59_v11 = vld [vmem:[%s441_s3] sm:$0xff]  ;;  %v155_v21 = vld [vmem:[%s443_s5 + $0x38] sm:$0xff]  ;;  %vm163_vm2 = vcmask 523264  }
   0x4   :  { %281 = vmatprep.mubr.msk.f32.mxu0 %vm333_vm1, %v332_v8  ;;  %274 = vmatpush3.msra.mxu0 %v62_v7  ;;  %v253_v16 = vld [vmem:[%s439_s1] ss:$0 sm:$0xff]  ;;  %v154_v22 = vld [vmem:[%s443_s5 + $0x30] sm:$0xff]  ;;  %v153_v23 = vld [vmem:[%s443_s5 + $0x28] sm:$0xff] }
   0x5   :  { %284 = vmatprep.subr.mxu1 %v332_v8  ;;  %275 = vmatprep.subr.mxu0 %v332_v8  ;;  %v254_v18 = vld [vmem:[%s440_s2] ss:$0 sm:$0xff]  ;;  %v151_v25 = vld [vmem:[%s443_s5 + $0x18] sm:$0xff]  ;;  %v150_v26 = vld [vmem:[%s443_s5 + $0x10] sm:$0xff] }
   0x6   :  { %300 = vmatprep.mubr.msk.f32.mxu1 %vm333_vm1, %v332_v8  ;;  %276 = vmatpush3.msra.mxu0 %v61_v9  ;;  %v152_v24 = vld [vmem:[%s443_s5 + $0x20] sm:$0xff]  ;;  %v149_v27 = vld [vmem:[%s443_s5 + $0x8] sm:$0xff] }
   0x7   :  { %277 = vmatprep.subr.mxu0 %v332_v8  ;;  %285 = vmatpush3.msra.mxu1 %v155_v21  ;;  %v148_v28 = vld [vmem:[%s443_s5] sm:$0xff]  ;;  %s334_s5 = smov [#allocation2]  }
   0x8   :  { %278 = vmatpush3.msra.mxu0 %v60_v10  ;;  %286 = vmatprep.subr.mxu1 %v332_v8  ;;  %v255_v29 = vld [vmem:[%s442_s4] ss:$0 sm:$0xff]  ;;  %s245_s30 = sshll.u32 %s334_s5, 4  ;;  %s246_s30 = int_to_ptr.vmem [resolvable:$true] %s245_s30 }
   0x9   :  { %279 = vmatprep.subr.mxu0 %v332_v8  ;;  %287 = vmatpush3.msra.mxu1 %v154_v22  ;;  %v257_v38 = vld [vmem:[%s444_s6] ss:$0 sm:$0xff]  ;;  %s310_s4 = scalar_lea.vmem %s246_s30, 128  ;;  %p315_p1 = scmp.lt.s32.totalorder %s246_s30, %s246_s30 }
   0xa   :  { %280 = vmatpush3.msra.mxu0 %v59_v11  ;;  %288 = vmatprep.subr.mxu1 %v332_v8  ;;  %p311_p0 = scmp.ne.s32.totalorder %s246_s30, %s310_s4  ;;  %p316_p2 = scmp.lt.s32.totalorder %s310_s4, %s310_s4 }
   0xb   :  { %289 = vmatpush3.msra.mxu1 %v153_v23 }
   0xc   :  { %290 = vmatprep.subr.mxu1 %v332_v8  ;;  %p317_p3 = por %p316_p2, %p315_p1 }
   0xd   :  { %291 = vmatpush3.msra.mxu1 %v152_v24 }
   0xe   :  { %292 = vmatprep.subr.mxu1 %v332_v8  ;;  %p318_p4 = pnand %p317_p3, %p311_p0 }
   0xf   :  { %293 = vmatpush3.msra.mxu1 %v151_v25 }
  0x10   :  { %294 = vmatprep.subr.mxu1 %v332_v8 }
  0x11   :  { %295 = vmatpush3.msra.mxu1 %v150_v26 }
  0x12   :  { %296 = vmatprep.subr.mxu1 %v332_v8 }
  0x13   :  { %297 = vmatpush3.msra.mxu1 %v149_v27 }
  0x14   :  { %298 = vmatprep.subr.mxu1 %v332_v8 }
  0x15   :  { %299 = vmatpush3.msra.mxu1 %v148_v28 }
  0x8c   :  { %v31_v2 = vpop.xlane.xlu0 %30 }
  0x8d   :  { %v33_v3 = vmul.f32 0.03125, %v31_v2 }
  0x8f   :  { %v34_v4 = vsub.f32 %v378_v0, %v33_v3 }
  0x91   :  { %v35_v5 = vmul.f32 %v34_v4, %v34_v4 }
  0x93   :  { %v36_v6 = vsel %vm28_vm0, %v35_v5, 0.0 }
  0x94   :  { %37 = vadd.xlane.f32.xlu0 %v36_v6 }
 0x11d   :  { %v38_v12 = vpop.xlane.xlu0 %37 }
 0x11e   :  { %v39_v13 = vmul.f32 0.03125, %v38_v12 }
 0x120   :  { %v40_v14 = vadd.f32 1e-05, %v39_v13 }
 0x122   :  { %306 = vrsqrt.f32 %v40_v14 }
 0x12f   :  { %v307_v15 = vpop.eup %306 }
 0x130   :  { %v42_v17 = vmul.f32 %v307_v15, %v34_v4 }
 0x132   :  { %v50_v19 = vmul.f32 %v253_v16, %v42_v17 }
 0x134   :  { %v58_v20 = vadd.f32 %v254_v18, %v50_v19 }
 0x136   :  { %282 = vmatmul.mubr.msk.f32.vlgmr.msra.gmra.mxu0 %vm28_vm0, %v58_v20 }
 0x1f6   :  { %v139_v30 = vpop.f32.mrf.mxu0 }
 0x1f7   :  { %v140_v31 = vadd.f32 %v255_v29, %v139_v30 }
 0x1f8   :  { %v283_v32 = vpop.f32.mrf.mxu0 }
 0x1f9   :  { %v144_v33 = vmul.f32 0.70710677, %v140_v31  ;;  %v143_v35 = vmul.f32 0.5, %v140_v31 }
 0x1fb   :  { %308 = verf.f32 %v144_v33 }
 0x208   :  { %v309_v34 = vpop.eup %308 }
 0x209   :  { %v146_v36 = vadd.f32 1.0, %v309_v34 }
 0x20b   :  { %v147_v37 = vmul.f32 %v146_v36, %v143_v35 }
 0x20d   :  { %301 = vmatmul.mubr.msk.f32.vlgmr.msra.gmra.mxu1 %vm163_vm2, %v147_v37 }
 0x2cd   :  { %v233_v39 = vpop.f32.mrf.mxu1 }
 0x2ce   :  { %v234_v40 = vadd.f32 %v257_v38, %v233_v39 }
 0x2cf   :  { %v302_v41 = vpop.f32.mrf.mxu1 }
 0x2d0   :  { %v237_v42 = vadd.f32 %v234_v40, %v378_v0 }
 0x2d2   :  { %238 = vst.msk [vmem:[#allocation2] sm:$0xff] %vm28_vm0, %v237_v42 }
 0x2d3   :  { %321 = shalt.err (!%p318_p4)
}
 0x2d4   :  { %248 = dma.vmem_to_hbm [thread:$0]  %s246_s30, 128, %s445_s7, [#allocation3]  }
 0x2d5   :  { %330 = dma.done.wait [#allocation3], 128  }
 0x2d6   :  { %331 = vsyncadd [#allocation3], 4294967168 }
 0x2d7   :  { %252 = vsyncpa [#allocation3], 1 }

</bundles_post_ra>
